<compile_context>
chip_gen: v5e
topology: v5e:2x2
jax: 0.10.0
libtpu: 0.0.40
codegen_flags: <defaults>
</compile_context>

<pallas_src>
import functools

import jax
import jax.numpy as jnp
from jax import lax
from jax.experimental import pallas as pl
from jax.experimental.pallas import tpu as pltpu


def _upconv_kernel(w_ref, b_ref, x_ref, o_ref, y_scr, *, K, stride, L_out, S):
    """One batch element per grid step.

    w_ref : (K, C_out, C_in)        conv weight, tap-major (resident)
    b_ref : (C_out, 1)              bias (resident)
    x_ref : (1, C_in, L_ext)        input padded by (padding + stride) each side
    o_ref : (1, S, C_out, L_out)    per-phase upsampled output planes
    y_scr : (C_out, L_out + 2)      VMEM scratch: conv output at positions -1..L_out
    """
    c_out = o_ref.shape[2]
    n_ext = L_out + 2  # conv evaluated at positions -1 .. L_out (edge cols are dummies)

    # ---- Conv1d: K shifted accumulating matmuls straight from the input block ----
    acc = jnp.zeros((c_out, n_ext), jnp.float32)
    for k in range(K):  # K is tiny and static -> unrolled
        if stride == 1:
            xk = x_ref[0, :, k:k + n_ext]                       # (C_in, L_out+2)
        else:
            # TODO(synk): strided tap load for stride > 1 (not exercised by the demo).
            xk = x_ref[0, :, pl.ds(k, n_ext, stride=stride)]
        acc = acc + jnp.dot(w_ref[k], xk, preferred_element_type=jnp.float32)
    y_scr[...] = acc + b_ref[...]                               # bias added once

    # Shifted views of the conv output via cheap VMEM re-loads (no roll/reshape).
    y      = y_scr[:, 1:L_out + 1]   # y[:, i]           (real conv output)
    y_prev = y_scr[:, 0:L_out]       # y[:, i-1]  (col 0 is a dummy, weight-zeroed)
    y_next = y_scr[:, 2:L_out + 2]   # y[:, i+1]  (last col is a dummy, weight-zeroed)

    lane = lax.broadcasted_iota(jnp.int32, (c_out, L_out), 1)

    # ---- Linear upsample: 2-tap lerp, one lane-dense store per phase ----
    for p in range(S):
        frac = (p + 0.5) / S - 0.5   # source offset of phase p relative to i
        if frac >= 0.0:
            # out = (1-frac)*y[i] + frac*y[i+1], clamped at the right edge.
            wv = jnp.where(lane == L_out - 1, 0.0, frac).astype(jnp.float32)
            up = (1.0 - wv) * y + wv * y_next
        else:
            # out = (1+frac)*y[i] + (-frac)*y[i-1], clamped at the left edge.
            wv = jnp.where(lane == 0, 0.0, -frac).astype(jnp.float32)
            up = (1.0 - wv) * y + wv * y_prev
        o_ref[0, p] = up.astype(o_ref.dtype)


def upconv_block(x, weight, bias, *, stride, padding, scale_factor):
    """x: (B, C_in, L) f32; weight: (C_out, C_in, K); bias: (C_out,)."""
    B, C_in, L = x.shape
    C_out, _, K = weight.shape
    S = int(scale_factor)
    if S != scale_factor or S < 1:
        raise NotImplementedError("integer scale_factor required")  # TODO(synk)

    L_out = (L + 2 * padding - K) // stride + 1
    L_up = L_out * S
    L_ext = L + 2 * (padding + stride)

    # Pad by an extra `stride` on each side so the kernel can evaluate the conv at
    # positions -1 and L_out too (dummy edge columns, zero-weighted in the lerp).
    x_ext = jnp.pad(x, ((0, 0), (0, 0), (padding + stride, padding + stride)))
    wt = jnp.transpose(weight, (2, 0, 1))        # (K, C_out, C_in): tap-major slices
    b2 = bias.reshape(C_out, 1)

    kernel = functools.partial(_upconv_kernel, K=K, stride=stride, L_out=L_out, S=S)

    out = pl.pallas_call(
        kernel,
        out_shape=jax.ShapeDtypeStruct((B, S, C_out, L_out), x.dtype),
        grid_spec=pltpu.PrefetchScalarGridSpec(
            num_scalar_prefetch=0,
            grid=(B,),
            in_specs=[
                pl.BlockSpec((K, C_out, C_in), lambda b: (0, 0, 0)),   # resident
                pl.BlockSpec((C_out, 1), lambda b: (0, 0)),            # resident
                pl.BlockSpec((1, C_in, L_ext), lambda b: (b, 0, 0)),
            ],
            out_specs=pl.BlockSpec((1, S, C_out, L_out), lambda b: (b, 0, 0, 0)),
            scratch_shapes=[pltpu.VMEM((C_out, L_out + 2), jnp.float32)],
        ),
        compiler_params=pltpu.CompilerParams(
            dimension_semantics=("parallel",)),
    )(wt, b2, x_ext)

    # Interleave the S phase planes into the length axis:
    # (B, S, C_out, L_out) -> (B, C_out, L_out, S) -> (B, C_out, L_up).
    return out.transpose(0, 2, 3, 1).reshape(B, C_out, L_up)


# ----------------------- pure-JAX reference (for checking) -----------------------
def _ref_forward(x, weight, bias, *, stride, padding, scale_factor):
    y = lax.conv_general_dilated(
        x, weight, window_strides=(stride,), padding=[(padding, padding)],
        dimension_numbers=("NCH", "OIH", "NCH"))
    y = y + bias[None, :, None]
    B, C, L_in = y.shape
    L_up = int(L_in * scale_factor)
    scale = L_in / L_up
    src = jnp.clip((jnp.arange(L_up) + 0.5) * scale - 0.5, 0.0, L_in - 1)
    x0 = jnp.floor(src).astype(jnp.int32)
    x1 = jnp.minimum(x0 + 1, L_in - 1)
    w1 = src - x0
    return y[:, :, x0] * (1.0 - w1) + y[:, :, x1] * w1


if __name__ == "__main__":
    key = jax.random.PRNGKey(0)
    kx, kw, kb = jax.random.split(key, 3)

    # UpConvBlock(in_ch=4, out_ch=8, scale_factor=2, kernel_size=3, stride=1,
    #             padding=1, mode='linear'); input (B=2, C=4, L=16)
    B, C_in, C_out, L = 2, 4, 8, 16
    K, stride, padding, scale_factor = 3, 1, 1, 2

    x = jax.random.normal(kx, (B, C_in, L), jnp.float32)
    fan_in = C_in * K
    bound = 1.0 / (fan_in ** 0.5)
    w = jax.random.uniform(kw, (C_out, C_in, K), jnp.float32, -bound, bound)
    b = jax.random.uniform(kb, (C_out,), jnp.float32, -bound, bound)

    out = upconv_block(x, w, b, stride=stride, padding=padding,
                       scale_factor=scale_factor)
    out = jax.block_until_ready(out)

    ref = _ref_forward(x, w, b, stride=stride, padding=padding,
                       scale_factor=scale_factor)
    assert out.shape == (B, C_out, L * scale_factor), out.shape
    assert jnp.allclose(out, ref, atol=1e-5, rtol=1e-5), "mismatch vs reference"

    print("KERNEL_OK")
</pallas_src>

<mosaic_0001>
module attributes {stable_mosaic.version = 11 : i64} {
  func.func @_upconv_kernel(%arg0: i32, %arg1: memref<3x8x4xf32, #tpu.memory_space<vmem>>, %arg2: memref<8x1xf32, #tpu.memory_space<vmem>>, %arg3: memref<1x4x20xf32, #tpu.memory_space<vmem>>, %arg4: memref<1x2x8x16xf32, #tpu.memory_space<vmem>>, %arg5: memref<8x18xf32, #tpu.memory_space<vmem>>) attributes {dimension_semantics = [#tpu.dimension_semantics<parallel>], iteration_bounds = array<i64: 2>, scalar_prefetch = 0 : i64, scratch_operands = 1 : i64, tpu.core_type = #tpu.core_type<tc>, window_params = [{pipeline_mode = #tpu.pipeline_mode<synchronous>, transform_indices = @transform_0, window_bounds = array<i64: 3, 8, 4>}, {pipeline_mode = #tpu.pipeline_mode<synchronous>, transform_indices = @transform_1, window_bounds = array<i64: 8, 1>}, {transform_indices = @transform_2, window_bounds = array<i64: 1, 4, 20>}, {transform_indices = @transform_3, window_bounds = array<i64: 1, 2, 8, 16>}]} {
    %cst = arith.constant 0.000000e+00 : f32
    %0 = vector.broadcast %cst : f32 to vector<8x18xf32>
    %c0 = arith.constant 0 : index
    %c0_0 = arith.constant 0 : index
    %c0_1 = arith.constant 0 : index
    %1 = vector.load %arg3[%c0, %c0_0, %c0_1] : memref<1x4x20xf32, #tpu.memory_space<vmem>>, vector<1x4x18xf32>
    %2 = vector.shape_cast %1 : vector<1x4x18xf32> to vector<4x18xf32>
    %c0_2 = arith.constant 0 : index
    %c0_3 = arith.constant 0 : index
    %c0_4 = arith.constant 0 : index
    %3 = vector.load %arg1[%c0_2, %c0_3, %c0_4] : memref<3x8x4xf32, #tpu.memory_space<vmem>>, vector<1x8x4xf32>
    %4 = vector.shape_cast %3 : vector<1x8x4xf32> to vector<8x4xf32>
    %cst_5 = arith.constant dense<0.000000e+00> : vector<8x18xf32>
    %5 = tpu.matmul %4, %2, %cst_5 {dimension_numbers = #tpu.dot_dimension_numbers<[1], [0], [0], [1], [0, 0, 1, 1], [], []>} : vector<8x4xf32>, vector<4x18xf32>, vector<8x18xf32> -> vector<8x18xf32>
    %6 = arith.addf %0, %5 : vector<8x18xf32>
    %c0_6 = arith.constant 0 : index
    %c0_7 = arith.constant 0 : index
    %c1 = arith.constant 1 : index
    %7 = vector.load %arg3[%c0_6, %c0_7, %c1] : memref<1x4x20xf32, #tpu.memory_space<vmem>>, vector<1x4x18xf32>
    %8 = vector.shape_cast %7 : vector<1x4x18xf32> to vector<4x18xf32>
    %c1_8 = arith.constant 1 : index
    %c0_9 = arith.constant 0 : index
    %c0_10 = arith.constant 0 : index
    %9 = vector.load %arg1[%c1_8, %c0_9, %c0_10] : memref<3x8x4xf32, #tpu.memory_space<vmem>>, vector<1x8x4xf32>
    %10 = vector.shape_cast %9 : vector<1x8x4xf32> to vector<8x4xf32>
    %cst_11 = arith.constant dense<0.000000e+00> : vector<8x18xf32>
    %11 = tpu.matmul %10, %8, %cst_11 {dimension_numbers = #tpu.dot_dimension_numbers<[1], [0], [0], [1], [0, 0, 1, 1], [], []>} : vector<8x4xf32>, vector<4x18xf32>, vector<8x18xf32> -> vector<8x18xf32>
    %12 = arith.addf %6, %11 : vector<8x18xf32>
    %c0_12 = arith.constant 0 : index
    %c0_13 = arith.constant 0 : index
    %c2 = arith.constant 2 : index
    %13 = vector.load %arg3[%c0_12, %c0_13, %c2] : memref<1x4x20xf32, #tpu.memory_space<vmem>>, vector<1x4x18xf32>
    %14 = vector.shape_cast %13 : vector<1x4x18xf32> to vector<4x18xf32>
    %c2_14 = arith.constant 2 : index
    %c0_15 = arith.constant 0 : index
    %c0_16 = arith.constant 0 : index
    %15 = vector.load %arg1[%c2_14, %c0_15, %c0_16] : memref<3x8x4xf32, #tpu.memory_space<vmem>>, vector<1x8x4xf32>
    %16 = vector.shape_cast %15 : vector<1x8x4xf32> to vector<8x4xf32>
    %cst_17 = arith.constant dense<0.000000e+00> : vector<8x18xf32>
    %17 = tpu.matmul %16, %14, %cst_17 {dimension_numbers = #tpu.dot_dimension_numbers<[1], [0], [0], [1], [0, 0, 1, 1], [], []>} : vector<8x4xf32>, vector<4x18xf32>, vector<8x18xf32> -> vector<8x18xf32>
    %18 = arith.addf %12, %17 : vector<8x18xf32>
    %c0_18 = arith.constant 0 : index
    %c0_19 = arith.constant 0 : index
    %19 = vector.load %arg2[%c0_18, %c0_19] : memref<8x1xf32, #tpu.memory_space<vmem>>, vector<8x1xf32>
    %20 = vector.broadcast %19 : vector<8x1xf32> to vector<8x18xf32>
    %21 = arith.addf %18, %20 : vector<8x18xf32>
    %c0_20 = arith.constant 0 : index
    %c0_21 = arith.constant 0 : index
    %22 = vector.load %arg5[%c0_20, %c0_21] : memref<8x18xf32, #tpu.memory_space<vmem>>, vector<8x18xf32>
    tpu.vector_store %arg5[%c0_20, %c0_21], %21 {strides = array<i32>} : memref<8x18xf32, #tpu.memory_space<vmem>>, vector<8x18xf32>,
    %c0_22 = arith.constant 0 : index
    %c1_23 = arith.constant 1 : index
    %23 = vector.load %arg5[%c0_22, %c1_23] : memref<8x18xf32, #tpu.memory_space<vmem>>, vector<8x16xf32>
    %c0_24 = arith.constant 0 : index
    %c0_25 = arith.constant 0 : index
    %24 = vector.load %arg5[%c0_24, %c0_25] : memref<8x18xf32, #tpu.memory_space<vmem>>, vector<8x16xf32>
    %c0_26 = arith.constant 0 : index
    %c2_27 = arith.constant 2 : index
    %25 = vector.load %arg5[%c0_26, %c2_27] : memref<8x18xf32, #tpu.memory_space<vmem>>, vector<8x16xf32>
    %26 = tpu.iota {dimensions = array<i32: 1>} : vector<8x16xi32>
    %c0_i32 = arith.constant 0 : i32
    %27 = vector.broadcast %c0_i32 : i32 to vector<8x16xi32>
    %28 = arith.cmpi eq, %26, %27 : vector<8x16xi32>
    %cst_28 = arith.constant 0.000000e+00 : f32
    %cst_29 = arith.constant 2.500000e-01 : f32
    %29 = vector.broadcast %cst_28 : f32 to vector<8x16xf32>
    %30 = vector.broadcast %cst_29 : f32 to vector<8x16xf32>
    %31 = arith.select %28, %29, %30 : vector<8x16xi1>, vector<8x16xf32>
    %cst_30 = arith.constant 1.000000e+00 : f32
    %32 = vector.broadcast %cst_30 : f32 to vector<8x16xf32>
    %33 = arith.subf %32, %31 : vector<8x16xf32>
    %34 = arith.mulf %33, %23 : vector<8x16xf32>
    %35 = arith.mulf %31, %24 : vector<8x16xf32>
    %36 = arith.addf %34, %35 : vector<8x16xf32>
    %c0_31 = arith.constant 0 : index
    %c0_32 = arith.constant 0 : index
    %c0_33 = arith.constant 0 : index
    %c0_34 = arith.constant 0 : index
    %37 = vector.load %arg4[%c0_31, %c0_32, %c0_33, %c0_34] : memref<1x2x8x16xf32, #tpu.memory_space<vmem>>, vector<1x1x8x16xf32>
    %38 = vector.shape_cast %37 : vector<1x1x8x16xf32> to vector<8x16xf32>
    %39 = vector.shape_cast %36 : vector<8x16xf32> to vector<1x1x8x16xf32>
    tpu.vector_store %arg4[%c0_31, %c0_32, %c0_33, %c0_34], %39 {strides = array<i32>} : memref<1x2x8x16xf32, #tpu.memory_space<vmem>>, vector<1x1x8x16xf32>,
    %c15_i32 = arith.constant 15 : i32
    %40 = vector.broadcast %c15_i32 : i32 to vector<8x16xi32>
    %41 = arith.cmpi eq, %26, %40 : vector<8x16xi32>
    %cst_35 = arith.constant 0.000000e+00 : f32
    %cst_36 = arith.constant 2.500000e-01 : f32
    %42 = vector.broadcast %cst_35 : f32 to vector<8x16xf32>
    %43 = vector.broadcast %cst_36 : f32 to vector<8x16xf32>
    %44 = arith.select %41, %42, %43 : vector<8x16xi1>, vector<8x16xf32>
    %cst_37 = arith.constant 1.000000e+00 : f32
    %45 = vector.broadcast %cst_37 : f32 to vector<8x16xf32>
    %46 = arith.subf %45, %44 : vector<8x16xf32>
    %47 = arith.mulf %46, %23 : vector<8x16xf32>
    %48 = arith.mulf %44, %25 : vector<8x16xf32>
    %49 = arith.addf %47, %48 : vector<8x16xf32>
    %c0_38 = arith.constant 0 : index
    %c1_39 = arith.constant 1 : index
    %c0_40 = arith.constant 0 : index
    %c0_41 = arith.constant 0 : index
    %50 = vector.load %arg4[%c0_38, %c1_39, %c0_40, %c0_41] : memref<1x2x8x16xf32, #tpu.memory_space<vmem>>, vector<1x1x8x16xf32>
    %51 = vector.shape_cast %50 : vector<1x1x8x16xf32> to vector<8x16xf32>
    %52 = vector.shape_cast %49 : vector<8x16xf32> to vector<1x1x8x16xf32>
    tpu.vector_store %arg4[%c0_38, %c1_39, %c0_40, %c0_41], %52 {strides = array<i32>} : memref<1x2x8x16xf32, #tpu.memory_space<vmem>>, vector<1x1x8x16xf32>,
    return
  }
  func.func @transform_0(%arg0: i32) -> (i32, i32, i32) {
    %c0_i32 = arith.constant 0 : i32
    %c0_i32_0 = arith.constant 0 : i32
    %c0_i32_1 = arith.constant 0 : i32
    %c0_i32_2 = arith.constant 0 : i32
    return %c0_i32, %c0_i32_0, %c0_i32_1 : i32, i32, i32
  }
  func.func @transform_1(%arg0: i32) -> (i32, i32) {
    %c0_i32 = arith.constant 0 : i32
    %c0_i32_0 = arith.constant 0 : i32
    %c0_i32_1 = arith.constant 0 : i32
    return %c0_i32, %c0_i32_0 : i32, i32
  }
  func.func @transform_2(%arg0: i32) -> (i32, i32, i32) {
    %c0_i32 = arith.constant 0 : i32
    %c0_i32_0 = arith.constant 0 : i32
    %c0_i32_1 = arith.constant 0 : i32
    return %arg0, %c0_i32, %c0_i32_0 : i32, i32, i32
  }
  func.func @transform_3(%arg0: i32) -> (i32, i32, i32, i32) {
    %c0_i32 = arith.constant 0 : i32
    %c0_i32_0 = arith.constant 0 : i32
    %c0_i32_1 = arith.constant 0 : i32
    %c0_i32_2 = arith.constant 0 : i32
    return %arg0, %c0_i32, %c0_i32_0, %c0_i32_1 : i32, i32, i32, i32
  }
}

</mosaic_0001>

<bundles_post_ra>
// kernel: tpu_custom_call.1
= control target key start
LH: loop header
LB: loop body
LE: loop exit
PB: predicated region body
PF: predicated region fallthrough
CT: control target
= control target key end

     0   :  { %8 = vsyncpa [#allocation4], 0  ;;  %s630_s0 = inlined_call_operand.vmem [shape: f32[3,8,4], index: 0, kind: input, shape index: {}]   ;;  %s631_s1 = inlined_call_operand.vmem [shape: f32[8,1], index: 1, kind: input, shape index: {}]   ;;  %s632_s2 = inlined_call_operand.vmem [shape: f32[2,4,20], index: 2, kind: input, shape index: {}]   ;;  %s633_s3 = inlined_call_operand.hbm [shape: f32[2,2,8,16], index: 3, kind: output, shape index: {}]  }
   0x1   :  { %10 = vsyncpa [#allocation4 + $0x1], 0  ;;  %s526_s12 = smov 0   ;;  %s528_s13 = smov 0  }
   0x2   :  { %s530_s14 = smov 0   ;;  %s532_s15 = smov 0  }
   0x3 LB: > { %s547_s16 = sadd.s32 4294967295, %s498_s15   ;;  %s368_s17 = sadd.s32 4294967294, %s498_s15   ;;  %s498_s15 = sphi %s532_s15, %s639_s15   ;;  %s494_s14 = sphi %s530_s14, %s638_s14   ;;  %s490_s13 = sphi %s528_s13, %s637_s13   ;;  %s486_s12 = sphi %s526_s12, %s636_s12  }
   0x4   : > { %s551_s18 = sadd.s32 1, %s498_s15   ;;  %s91_s19 = sadd.s32 1, %s494_s14 }
   0x5   : > { %s88_s20 = ssub.s32 %s498_s15, %s551_s18  ;;  %p101_p0 = scmp.ne.s32.totalorder %s494_s14, %s490_s13 }
   0x6   : > { %p89_p1 = scmp.eq.s32.totalorder %s88_s20, 0  ;;  %p102_p2 = scmp.eq.s32.totalorder %s547_s16, 1 }
   0x7   : > { %p107_p3 = scmp.ne.s32.totalorder %s490_s13, %s486_s12  ;;  %p108_p4 = scmp.eq.s32.totalorder %s368_s17, 1 }
   0x8   : > { %s562_s21 = scalar_select %p89_p1, %s494_s14, %s91_s19  }
   0x9   : > { %p564_p5 = por %p102_p2, %p101_p0  ;;  %p568_p6 = por %p108_p4, %p107_p3 }
   0xa   : > { %p371_p7 = scmp.ge.s32.totalorder %s498_s15, 1  ;;  %p139_p8 = scmp.lt.s32.totalorder %s498_s15, 3 }
   0xc   : > { %p140_p9 = pnand %p371_p7, %p139_p8 }
   0xd   : > { %p162_p10 = scmp.lt.s32.totalorder (!%p140_p9), %s547_s16, 1  ;;  %s500_s29 = smov (!%p140_p9), 126  }
   0xe   : > { %143 = sbr.rel (%p140_p9) target bundleno = 412 (0x19c), region = 32  ;;  %s501_s30 = smov (!%p140_p9), 127  }
   0xf   : > { %s159_s17 = sand.u32 (!%p140_p9), 1, %s490_s13   ;;  %s388_s20 = sshll.u32 (!%p140_p9), %s547_s16, 4 }
  0x10   : > { %s372_s19 = sshll.u32 (!%p140_p9), %s159_s17, 4  ;;  %s302_s26 = scalar_lea.hbm (!%p140_p9), %s633_s3, %s388_s20 }
  0x11   : > { %s161_s27 = scalar_lea.vmem (!%p140_p9), [#allocation3], %s372_s19  ;;  %s456_s7 = scalar_lea.hbm (!%p140_p9), %s633_s3, 32 }
  0x13   : > { %s163_s24 = scalar_select %p162_p10, %s547_s16, 1  ;;  %vm177_vm0 = vcmask 1043456   ;;  %vm173_vm1 = vcmask 31744   ;;  %v167_v1 = vld [vmem:[%s630_s0] sm:$0xff]  ;;  %v502_v3 = vmov 0   ;;  %v379_v4 = vld [vmem:[%s630_s0 + $0x10] sm:$0xff]  ;;  %v265_v16 = vlaneseq }
  0x14   : > { %v255_v2 = vld [vmem:[%s631_s1] sm:$0xff]  ;;  %434 = vset.pattern.permute.xlu1 %v502_v3  ;;  %435 = vset.pattern.permute.xlu0 %v502_v3  ;;  %v374_v6 = vld [vmem:[%s630_s0 + $0x8] sm:$0xff]  ;;  %vm262_vm2 = vcmask 146432   ;;  %v503_v18 = vmov 0.25   ;;  %vm277_vm5 = vcmask 130048   ;;  %s291_s16 = scalar_lea.sflag [#allocation4], %s159_s17 }
  0x15   : > { %s373_s25 = sshll.u32 %s163_s24, 2  ;;  %258 = vperm.xlu1 %434, %v255_v2   ;;  %v266_v17 = vand.u32 127, %v265_v16 }
  0x16   : > { %s165_s28 = scalar_lea.vmem %s632_s2, %s373_s25 }
  0x17   : > { %v166_v0 = vld [vmem:[%s165_s28] sm:$0xf]  ;;  %vm279_vm3 = vcmp.eq.s32.totalorder %v266_v17, 15  ;;  %vm267_vm4 = vcmp.eq.s32.totalorder %v266_v17, 0  ;;  %s303_s28 = sshll.u32 %s161_s27, 4  ;;  %s304_s28 = int_to_ptr.vmem [resolvable:$true] %s303_s28 }
  0x18   : > { %227 = vrot.lane.b32.xlu0 %v166_v0, %s500_s29  ;;  %377 = vmatpush.msk.msra.mxu1 %vm177_vm0, %v166_v0  ;;  %v280_v19 = vsel %vm279_vm3, 0.0, %v503_v18  ;;  %v268_v20 = vsel %vm267_vm4, 0.0, %v503_v18 }
  0x19   : > { %378 = vmatmul.msk.f32.vlgmr.msra.gmra.mxu1 %vm173_vm1, %v167_v1  ;;  %v269_v21 = vsub.f32 1.0, %v268_v20  ;;  %v281_v22 = vsub.f32 1.0, %v280_v19 }
  0x20   : > { %171 = vrot.lane.b32.xlu0 %v166_v0, %s501_s30 }
  0x87   : > { %v259_v12 = vpop.permute.xlu1 %258 }
  0x8a   : > { %v228_v5 = vpop.permute.xlu0 %227 }
  0x8b   : > { %380 = vmatpush.msk.msra.mxu2 %vm177_vm0, %v228_v5 }
  0x8c   : > { %381 = vmatmul.msk.f32.vlgmr.msra.gmra.mxu2 %vm173_vm1, %v379_v4 }
  0x92   : > { %v172_v7 = vpop.permute.xlu0 %171 }
  0x93   : > { %375 = vmatpush.msk.msra.mxu0 %vm177_vm0, %v172_v7 }
  0x94   : > { %376 = vmatmul.msk.f32.vlgmr.msra.gmra.mxu0 %vm173_vm1, %v374_v6 }
  0x96   : > { %v222_v8 = vpop.f32.mrf.mxu1 }
 0x10f   : > { %v251_v10 = vpop.f32.mrf.mxu2 }
 0x111   : > { %v197_v9 = vpop.f32.mrf.mxu0 }
 0x112   : > { %v223_v11 = vadd.f32 %v222_v8, %v197_v9 }
 0x114   : > { %v254_v13 = vadd.f32 %v251_v10, %v223_v11 }
 0x116   : > { %v261_v14 = vadd.f32 %v259_v12, %v254_v13 }
 0x118   : > { %263 = vst.msk [vmem:[#allocation2] sm:$0xff] %vm262_vm2, %v261_v14 }
 0x11f   : > { %v264_v15 = vld [vmem:[#allocation2] sm:$0xff] }
 0x120   : > { %283 = vrot.lane.b32.xlu2 %v264_v15, %s500_s29  ;;  %271 = vrot.lane.b32.xlu1 %v264_v15, %s501_s30  ;;  %s305_s29 = sshll.u32 %s302_s26, 4  ;;  %v275_v27 = vmul.f32 %v268_v20, %v264_v15  ;;  %s306_s29 = int_to_ptr.hbm [resolvable:$true] %s305_s29 }
 0x121   : > { %s450_s30 = sshra.s32 %s306_s29, 4  ;;  %s451_s30 = int_to_ptr.hbm [resolvable:$true] %s450_s30 }
 0x122   : > { %s452_s4 = scalar_lea.hbm %s451_s30, 16  ;;  %p457_p0 = scmp.lt.s32.totalorder %s451_s30, %s633_s3 }
 0x123   : > { %p453_p11 = scmp.ne.s32.totalorder %s451_s30, %s452_s4  ;;  %p458_p1 = scmp.lt.s32.totalorder %s456_s7, %s452_s4 }
 0x125   : > { %p454_p12 = pnand %p453_p11, %p564_p5  ;;  %p459_p2 = por %p458_p1, %p457_p0 }
 0x127   : > { %p455_p13 = pneg %p454_p12 }
 0x129   : > { %p460_p3 = pnand %p459_p2, %p455_p13 }
 0x17a   : > { %v284_v23 = vpop.permute.xlu2 %283 }
 0x17b   : > { %v286_v25 = vmul.f32 %v284_v23, %v280_v19 }
 0x192   : > { %v272_v24 = vpop.permute.xlu1 %271 }
 0x193   : > { %v274_v26 = vmul.f32 %v272_v24, %v269_v21  ;;  %v282_v28 = vmul.f32 %v281_v22, %v272_v24 }
 0x195   : > { %v276_v29 = vadd.f32 %v275_v27, %v274_v26  ;;  %v287_v30 = vadd.f32 %v286_v25, %v282_v28 }
 0x197   : > { %278 = vst.msk [vmem:[%s161_s27] sm:$0xff] %vm277_vm5, %v276_v29 }
 0x198   : > { %382 = vst.msk [vmem:[%s161_s27 + $0x8] sm:$0xff] %vm277_vm5, %v287_v30 }
 0x199   : > { %463 = shalt.err (!%p460_p3)
}
 0x19a   : > { %s504_s10 = smov 128   ;;  %s505_s11 = smov 8  }
 0x19b   : > { %389 = dma.vmem_to_hbm [thread:$0]  (%p564_p5), %s304_s28, 256, %s306_s29, %s291_s16, %s504_s10, %s504_s10, %s505_s11  }
 0x19c PF: > { %p395_p4 = scmp.ge.s32.totalorder %s498_s15, 2  ;;  %s320_s17 = sand.u32 1, %s486_s12  }
 0x19d   : > { %s321_s19 = scalar_lea.sflag [#allocation4], %s320_s17 }
 0x19e   : > { %p392_p7 = pnand %p395_p4, %p568_p6 }
 0x1a0   : > { %p393_p8 = pneg %p392_p7 }
 0x1a2   : > { %481 = dma.done.wait (%p393_p8), %s321_s19, 256  }
 0x1a3   : > { %483 = vsyncadd (%p393_p8), %s321_s19, 4294967040  ;;  %p13_p9 = scmp.ge.s32.totalorder %s551_s18, 4   ;;  %s636_s12 = smov %s490_s13 }
 0x1a4   : > { %s637_s13 = smov %s494_s14  ;;  %s638_s14 = smov %s562_s21 }
 0x1a5   : > { %s639_s15 = smov %s551_s18  ;;  %15 = sbr.rel (!%p13_p9) target bundleno = 3 (0x3), region = 70 }
 0x1aa   :  { %327 = vsyncpa [#allocation4], 1 }
 0x1ab   :  { %329 = vsyncpa [#allocation4 + $0x1], 1 }

</bundles_post_ra>
